<compile_context>
chip_gen: v6e
topology: v6e:2x2x1
jax: 0.10.0
libtpu: 0.0.40
codegen_flags: <defaults>
</compile_context>

<pallas_src>
import functools

import jax
import jax.numpy as jnp
from jax import lax
from jax.experimental import pallas as pl
from jax.experimental.pallas import tpu as pltpu


def _ceil_half(n):
    return -(-n // 2)


def _circular_stride2_conv(x, w_taps):
    """One Conv1d(k=3, stride=2, padding=1, padding_mode='circular', bias=False).

    x      : (L, C) time-major value already resident in VMEM/vregs.
    w_taps : three (C, C) matrices, w_taps[k][ci, co] = torch_weight[co, ci, k].
    Returns: (ceil(L/2), C) float32.

    y[t] = sum_k x[(2t + k - 1) mod L] @ W_k   (exact PyTorch circular-pad conv)
    The row gather is expressed as a 0/1 selection matmul so it runs on the MXU
    with no reshapes / strided accesses.
    """
    L, C = x.shape
    Lout = _ceil_half(L)
    xf = x.astype(jnp.float32)

    t_idx = lax.broadcasted_iota(jnp.int32, (Lout, L), 0)   # output row t
    j_idx = lax.broadcasted_iota(jnp.int32, (Lout, L), 1)   # input  row j

    acc = None
    for k, wk in enumerate(w_taps):
        src = 2 * t_idx + (k - 1)                 # in [-1, L]
        src = jnp.where(src < 0, src + L, src)    # circular wrap (left pad)
        src = jnp.where(src >= L, src - L, src)   # circular wrap (right pad)
        sel = (j_idx == src).astype(jnp.float32)  # (Lout, L) 0/1 gather matrix
        gathered = jnp.dot(sel, xf, preferred_element_type=jnp.float32)   # (Lout, C)
        term = jnp.dot(gathered, wk, preferred_element_type=jnp.float32)  # (Lout, C)
        acc = term if acc is None else acc + term
    return acc


def _cascade_kernel(x_ref, w0_ref, w1_ref, w2_ref, *o_refs):
    """One batch element: run the whole stride-2 cascade, intermediates in VMEM."""
    w_taps = (w0_ref[...], w1_ref[...], w2_ref[...])
    cur = x_ref[...]                                  # (L0, C)
    for o_ref in o_refs:                              # statically unrolled scales
        cur = _circular_stride2_conv(cur, w_taps)     # (ceil(L/2), C) f32
        o_ref[...] = cur.astype(o_ref.dtype)          # each scale written once


def multi_scale_downsample(x, conv_weight, num_scales=3):
    """Mirrors Model.__multi_scale_process_inputs' x_enc path.

    x           : (B, L, C) array (the model's x_enc, channel-last).
    conv_weight : (C, C, 3) torch-layout Conv1d weight (out, in, k); bias=False.
    Returns [x, down1, ..., down_num_scales], down_s of shape (B, ceil(L/2**s), C).
    """
    B, L, C = x.shape
    assert conv_weight.shape == (C, C, 3)

    # (C_out, C_in, k) -> per-tap (C_in, C_out) so the kernel contracts ci -> co.
    w_taps = [jnp.asarray(conv_weight[:, :, k].T, jnp.float32) for k in range(3)]

    out_lens = []
    cur_len = L
    for _ in range(num_scales):
        cur_len = _ceil_half(cur_len)
        out_lens.append(cur_len)

    out_shape = tuple(jax.ShapeDtypeStruct((B, Ls, C), x.dtype) for Ls in out_lens)

    in_specs = [
        pl.BlockSpec((None, L, C), lambda b: (b, 0, 0)),   # one batch row of x
        pl.BlockSpec((C, C), lambda b: (0, 0)),            # tap-0 weight (resident)
        pl.BlockSpec((C, C), lambda b: (0, 0)),            # tap-1 weight
        pl.BlockSpec((C, C), lambda b: (0, 0)),            # tap-2 weight
    ]
    out_specs = tuple(
        pl.BlockSpec((None, Ls, C), lambda b: (b, 0, 0)) for Ls in out_lens)

    # VMEM budget from the actual footprint (double-buffered blocks + resident
    # weights + the largest level's selection/gather temporaries), 2x headroom.
    f32 = 4
    io_bytes = 2 * (L * C + sum(out_lens) * C) * f32
    w_bytes = 3 * C * C * f32
    tmp_bytes, l_in = 0, L
    for l_out in out_lens:
        tmp_bytes = max(tmp_bytes, (3 * l_out * l_in + 4 * l_out * C) * f32)
        l_in = l_out
    vmem_limit = int(min(max(2 * (io_bytes + w_bytes + tmp_bytes), 4 << 20), 48 << 20))

    outs = pl.pallas_call(
        _cascade_kernel,
        out_shape=out_shape,
        grid_spec=pltpu.PrefetchScalarGridSpec(
            num_scalar_prefetch=0,
            grid=(B,),
            in_specs=in_specs,
            out_specs=out_specs,
        ),
        compiler_params=pltpu.CompilerParams(
            dimension_semantics=("parallel",),
            vmem_limit_bytes=vmem_limit,
        ),
    )(x, *w_taps)
    return [x] + list(outs)


def _reference_downsample(x, conv_weight, num_scales=3):
    """Pure-JAX reference: circular padding + stride-2 conv in NCW, like PyTorch."""
    outs = [x]
    cur = jnp.transpose(x, (0, 2, 1)).astype(jnp.float32)    # (B, C, L)
    w = jnp.asarray(conv_weight, jnp.float32)                # (C_out, C_in, 3)
    for _ in range(num_scales):
        padded = jnp.concatenate([cur[..., -1:], cur, cur[..., :1]], axis=-1)
        cur = lax.conv_general_dilated(
            padded, w, window_strides=(2,), padding=[(0, 0)],
            dimension_numbers=("NCW", "OIW", "NCW"))
        outs.append(jnp.transpose(cur, (0, 2, 1)).astype(x.dtype))
    return outs


if __name__ == "__main__":
    B, L, C = 2, 16, 4          # small shapes consistent with the module
    num_scales = 3              # Model.num_scales

    key = jax.random.PRNGKey(0)
    kx, kw, kx_odd = jax.random.split(key, 3)
    x = jax.random.normal(kx, (B, L, C), jnp.float32)
    # Shared down_pool weight, torch layout (C_out, C_in, 3); bias=False as in the Model.
    w = jax.random.normal(kw, (C, C, 3), jnp.float32) * 0.3

    fwd = jax.jit(functools.partial(multi_scale_downsample, num_scales=num_scales))
    outs = [jax.block_until_ready(o) for o in fwd(x, w)]

    refs = _reference_downsample(x, w, num_scales)
    for i, (o, r) in enumerate(zip(outs, refs)):
        assert o.shape == r.shape, (i, o.shape, r.shape)
        assert jnp.allclose(o, r, atol=1e-4, rtol=1e-4), f"scale {i} mismatch"

    # Also exercise odd intermediate lengths (13 -> 7 -> 4 -> 2), previously untested.
    x_odd = jax.random.normal(kx_odd, (B, 13, C), jnp.float32)
    outs_odd = [jax.block_until_ready(o) for o in fwd(x_odd, w)]
    refs_odd = _reference_downsample(x_odd, w, num_scales)
    for i, (o, r) in enumerate(zip(outs_odd, refs_odd)):
        assert o.shape == r.shape, (i, o.shape, r.shape)
        assert jnp.allclose(o, r, atol=1e-4, rtol=1e-4), f"odd-L scale {i} mismatch"

    print("KERNEL_OK")
</pallas_src>

<mosaic_0001>
module attributes {stable_mosaic.version = 11 : i64} {
  func.func @_cascade_kernel(%arg0: i32, %arg1: memref<1x16x4xf32, #tpu.memory_space<vmem>>, %arg2: memref<4x4xf32, #tpu.memory_space<vmem>>, %arg3: memref<4x4xf32, #tpu.memory_space<vmem>>, %arg4: memref<4x4xf32, #tpu.memory_space<vmem>>, %arg5: memref<1x8x4xf32, #tpu.memory_space<vmem>>, %arg6: memref<1x4x4xf32, #tpu.memory_space<vmem>>, %arg7: memref<1x2x4xf32, #tpu.memory_space<vmem>>) attributes {dimension_semantics = [#tpu.dimension_semantics<parallel>], iteration_bounds = array<i64: 2>, scalar_prefetch = 0 : i64, scratch_operands = 0 : i64, tpu.core_type = #tpu.core_type<tc>, window_params = [{transform_indices = @transform_0, window_bounds = array<i64: 1, 16, 4>}, {pipeline_mode = #tpu.pipeline_mode<synchronous>, transform_indices = @transform_1, window_bounds = array<i64: 4, 4>}, {pipeline_mode = #tpu.pipeline_mode<synchronous>, transform_indices = @transform_2, window_bounds = array<i64: 4, 4>}, {pipeline_mode = #tpu.pipeline_mode<synchronous>, transform_indices = @transform_3, window_bounds = array<i64: 4, 4>}, {transform_indices = @transform_4, window_bounds = array<i64: 1, 8, 4>}, {transform_indices = @transform_5, window_bounds = array<i64: 1, 4, 4>}, {transform_indices = @transform_6, window_bounds = array<i64: 1, 2, 4>}]} {
    %c0 = arith.constant 0 : index
    %c0_0 = arith.constant 0 : index
    %0 = vector.load %arg2[%c0, %c0_0] : memref<4x4xf32, #tpu.memory_space<vmem>>, vector<4x4xf32>
    %c0_1 = arith.constant 0 : index
    %c0_2 = arith.constant 0 : index
    %1 = vector.load %arg3[%c0_1, %c0_2] : memref<4x4xf32, #tpu.memory_space<vmem>>, vector<4x4xf32>
    %c0_3 = arith.constant 0 : index
    %c0_4 = arith.constant 0 : index
    %2 = vector.load %arg4[%c0_3, %c0_4] : memref<4x4xf32, #tpu.memory_space<vmem>>, vector<4x4xf32>
    %c0_5 = arith.constant 0 : index
    %c0_6 = arith.constant 0 : index
    %c0_7 = arith.constant 0 : index
    %3 = vector.load %arg1[%c0_5, %c0_6, %c0_7] : memref<1x16x4xf32, #tpu.memory_space<vmem>>, vector<1x16x4xf32>
    %4 = vector.shape_cast %3 : vector<1x16x4xf32> to vector<16x4xf32>
    %5 = tpu.iota {dimensions = array<i32: 0>} : vector<8x16xi32>
    %6 = tpu.iota {dimensions = array<i32: 1>} : vector<8x16xi32>
    %c2_i32 = arith.constant 2 : i32
    %7 = vector.broadcast %c2_i32 : i32 to vector<8x16xi32>
    %8 = arith.muli %7, %5 : vector<8x16xi32>
    %c-1_i32 = arith.constant -1 : i32
    %9 = vector.broadcast %c-1_i32 : i32 to vector<8x16xi32>
    %10 = arith.addi %8, %9 : vector<8x16xi32>
    %c0_i32 = arith.constant 0 : i32
    %11 = vector.broadcast %c0_i32 : i32 to vector<8x16xi32>
    %12 = arith.cmpi slt, %10, %11 : vector<8x16xi32>
    %c16_i32 = arith.constant 16 : i32
    %13 = vector.broadcast %c16_i32 : i32 to vector<8x16xi32>
    %14 = arith.addi %10, %13 : vector<8x16xi32>
    %15 = arith.select %12, %14, %10 : vector<8x16xi1>, vector<8x16xi32>
    %c16_i32_8 = arith.constant 16 : i32
    %16 = vector.broadcast %c16_i32_8 : i32 to vector<8x16xi32>
    %17 = arith.cmpi sge, %15, %16 : vector<8x16xi32>
    %c16_i32_9 = arith.constant 16 : i32
    %18 = vector.broadcast %c16_i32_9 : i32 to vector<8x16xi32>
    %19 = arith.subi %15, %18 : vector<8x16xi32>
    %20 = arith.select %17, %19, %15 : vector<8x16xi1>, vector<8x16xi32>
    %21 = arith.cmpi eq, %6, %20 : vector<8x16xi32>
    %22 = arith.extui %21 : vector<8x16xi1> to vector<8x16xi32>
    %23 = arith.sitofp %22 : vector<8x16xi32> to vector<8x16xf32>
    %cst = arith.constant dense<0.000000e+00> : vector<8x4xf32>
    %24 = tpu.matmul %23, %4, %cst {dimension_numbers = #tpu.dot_dimension_numbers<[1], [0], [0], [1], [0, 0, 1, 1], [], []>} : vector<8x16xf32>, vector<16x4xf32>, vector<8x4xf32> -> vector<8x4xf32>
    %cst_10 = arith.constant dense<0.000000e+00> : vector<8x4xf32>
    %25 = tpu.matmul %24, %0, %cst_10 {dimension_numbers = #tpu.dot_dimension_numbers<[1], [0], [0], [1], [0, 0, 1, 1], [], []>} : vector<8x4xf32>, vector<4x4xf32>, vector<8x4xf32> -> vector<8x4xf32>
    %c2_i32_11 = arith.constant 2 : i32
    %26 = vector.broadcast %c2_i32_11 : i32 to vector<8x16xi32>
    %27 = arith.muli %26, %5 : vector<8x16xi32>
    %c0_i32_12 = arith.constant 0 : i32
    %28 = vector.broadcast %c0_i32_12 : i32 to vector<8x16xi32>
    %29 = arith.addi %27, %28 : vector<8x16xi32>
    %c0_i32_13 = arith.constant 0 : i32
    %30 = vector.broadcast %c0_i32_13 : i32 to vector<8x16xi32>
    %31 = arith.cmpi slt, %29, %30 : vector<8x16xi32>
    %c16_i32_14 = arith.constant 16 : i32
    %32 = vector.broadcast %c16_i32_14 : i32 to vector<8x16xi32>
    %33 = arith.addi %29, %32 : vector<8x16xi32>
    %34 = arith.select %31, %33, %29 : vector<8x16xi1>, vector<8x16xi32>
    %c16_i32_15 = arith.constant 16 : i32
    %35 = vector.broadcast %c16_i32_15 : i32 to vector<8x16xi32>
    %36 = arith.cmpi sge, %34, %35 : vector<8x16xi32>
    %c16_i32_16 = arith.constant 16 : i32
    %37 = vector.broadcast %c16_i32_16 : i32 to vector<8x16xi32>
    %38 = arith.subi %34, %37 : vector<8x16xi32>
    %39 = arith.select %36, %38, %34 : vector<8x16xi1>, vector<8x16xi32>
    %40 = arith.cmpi eq, %6, %39 : vector<8x16xi32>
    %41 = arith.extui %40 : vector<8x16xi1> to vector<8x16xi32>
    %42 = arith.sitofp %41 : vector<8x16xi32> to vector<8x16xf32>
    %cst_17 = arith.constant dense<0.000000e+00> : vector<8x4xf32>
    %43 = tpu.matmul %42, %4, %cst_17 {dimension_numbers = #tpu.dot_dimension_numbers<[1], [0], [0], [1], [0, 0, 1, 1], [], []>} : vector<8x16xf32>, vector<16x4xf32>, vector<8x4xf32> -> vector<8x4xf32>
    %cst_18 = arith.constant dense<0.000000e+00> : vector<8x4xf32>
    %44 = tpu.matmul %43, %1, %cst_18 {dimension_numbers = #tpu.dot_dimension_numbers<[1], [0], [0], [1], [0, 0, 1, 1], [], []>} : vector<8x4xf32>, vector<4x4xf32>, vector<8x4xf32> -> vector<8x4xf32>
    %45 = arith.addf %25, %44 : vector<8x4xf32>
    %c2_i32_19 = arith.constant 2 : i32
    %46 = vector.broadcast %c2_i32_19 : i32 to vector<8x16xi32>
    %47 = arith.muli %46, %5 : vector<8x16xi32>
    %c1_i32 = arith.constant 1 : i32
    %48 = vector.broadcast %c1_i32 : i32 to vector<8x16xi32>
    %49 = arith.addi %47, %48 : vector<8x16xi32>
    %c0_i32_20 = arith.constant 0 : i32
    %50 = vector.broadcast %c0_i32_20 : i32 to vector<8x16xi32>
    %51 = arith.cmpi slt, %49, %50 : vector<8x16xi32>
    %c16_i32_21 = arith.constant 16 : i32
    %52 = vector.broadcast %c16_i32_21 : i32 to vector<8x16xi32>
    %53 = arith.addi %49, %52 : vector<8x16xi32>
    %54 = arith.select %51, %53, %49 : vector<8x16xi1>, vector<8x16xi32>
    %c16_i32_22 = arith.constant 16 : i32
    %55 = vector.broadcast %c16_i32_22 : i32 to vector<8x16xi32>
    %56 = arith.cmpi sge, %54, %55 : vector<8x16xi32>
    %c16_i32_23 = arith.constant 16 : i32
    %57 = vector.broadcast %c16_i32_23 : i32 to vector<8x16xi32>
    %58 = arith.subi %54, %57 : vector<8x16xi32>
    %59 = arith.select %56, %58, %54 : vector<8x16xi1>, vector<8x16xi32>
    %60 = arith.cmpi eq, %6, %59 : vector<8x16xi32>
    %61 = arith.extui %60 : vector<8x16xi1> to vector<8x16xi32>
    %62 = arith.sitofp %61 : vector<8x16xi32> to vector<8x16xf32>
    %cst_24 = arith.constant dense<0.000000e+00> : vector<8x4xf32>
    %63 = tpu.matmul %62, %4, %cst_24 {dimension_numbers = #tpu.dot_dimension_numbers<[1], [0], [0], [1], [0, 0, 1, 1], [], []>} : vector<8x16xf32>, vector<16x4xf32>, vector<8x4xf32> -> vector<8x4xf32>
    %cst_25 = arith.constant dense<0.000000e+00> : vector<8x4xf32>
    %64 = tpu.matmul %63, %2, %cst_25 {dimension_numbers = #tpu.dot_dimension_numbers<[1], [0], [0], [1], [0, 0, 1, 1], [], []>} : vector<8x4xf32>, vector<4x4xf32>, vector<8x4xf32> -> vector<8x4xf32>
    %65 = arith.addf %45, %64 : vector<8x4xf32>
    %c0_26 = arith.constant 0 : index
    %c0_27 = arith.constant 0 : index
    %c0_28 = arith.constant 0 : index
    %66 = vector.load %arg5[%c0_26, %c0_27, %c0_28] : memref<1x8x4xf32, #tpu.memory_space<vmem>>, vector<1x8x4xf32>
    %67 = vector.shape_cast %66 : vector<1x8x4xf32> to vector<8x4xf32>
    %68 = vector.shape_cast %65 : vector<8x4xf32> to vector<1x8x4xf32>
    tpu.vector_store %arg5[%c0_26, %c0_27, %c0_28], %68 {strides = array<i32>} : memref<1x8x4xf32, #tpu.memory_space<vmem>>, vector<1x8x4xf32>,
    %69 = tpu.iota {dimensions = array<i32: 0>} : vector<4x8xi32>
    %70 = tpu.iota {dimensions = array<i32: 1>} : vector<4x8xi32>
    %c2_i32_29 = arith.constant 2 : i32
    %71 = vector.broadcast %c2_i32_29 : i32 to vector<4x8xi32>
    %72 = arith.muli %71, %69 : vector<4x8xi32>
    %c-1_i32_30 = arith.constant -1 : i32
    %73 = vector.broadcast %c-1_i32_30 : i32 to vector<4x8xi32>
    %74 = arith.addi %72, %73 : vector<4x8xi32>
    %c0_i32_31 = arith.constant 0 : i32
    %75 = vector.broadcast %c0_i32_31 : i32 to vector<4x8xi32>
    %76 = arith.cmpi slt, %74, %75 : vector<4x8xi32>
    %c8_i32 = arith.constant 8 : i32
    %77 = vector.broadcast %c8_i32 : i32 to vector<4x8xi32>
    %78 = arith.addi %74, %77 : vector<4x8xi32>
    %79 = arith.select %76, %78, %74 : vector<4x8xi1>, vector<4x8xi32>
    %c8_i32_32 = arith.constant 8 : i32
    %80 = vector.broadcast %c8_i32_32 : i32 to vector<4x8xi32>
    %81 = arith.cmpi sge, %79, %80 : vector<4x8xi32>
    %c8_i32_33 = arith.constant 8 : i32
    %82 = vector.broadcast %c8_i32_33 : i32 to vector<4x8xi32>
    %83 = arith.subi %79, %82 : vector<4x8xi32>
    %84 = arith.select %81, %83, %79 : vector<4x8xi1>, vector<4x8xi32>
    %85 = arith.cmpi eq, %70, %84 : vector<4x8xi32>
    %86 = arith.extui %85 : vector<4x8xi1> to vector<4x8xi32>
    %87 = arith.sitofp %86 : vector<4x8xi32> to vector<4x8xf32>
    %cst_34 = arith.constant dense<0.000000e+00> : vector<4x4xf32>
    %88 = tpu.matmul %87, %65, %cst_34 {dimension_numbers = #tpu.dot_dimension_numbers<[1], [0], [0], [1], [0, 0, 1, 1], [], []>} : vector<4x8xf32>, vector<8x4xf32>, vector<4x4xf32> -> vector<4x4xf32>
    %cst_35 = arith.constant dense<0.000000e+00> : vector<4x4xf32>
    %89 = tpu.matmul %88, %0, %cst_35 {dimension_numbers = #tpu.dot_dimension_numbers<[1], [0], [0], [1], [0, 0, 1, 1], [], []>} : vector<4x4xf32>, vector<4x4xf32>, vector<4x4xf32> -> vector<4x4xf32>
    %c2_i32_36 = arith.constant 2 : i32
    %90 = vector.broadcast %c2_i32_36 : i32 to vector<4x8xi32>
    %91 = arith.muli %90, %69 : vector<4x8xi32>
    %c0_i32_37 = arith.constant 0 : i32
    %92 = vector.broadcast %c0_i32_37 : i32 to vector<4x8xi32>
    %93 = arith.addi %91, %92 : vector<4x8xi32>
    %c0_i32_38 = arith.constant 0 : i32
    %94 = vector.broadcast %c0_i32_38 : i32 to vector<4x8xi32>
    %95 = arith.cmpi slt, %93, %94 : vector<4x8xi32>
    %c8_i32_39 = arith.constant 8 : i32
    %96 = vector.broadcast %c8_i32_39 : i32 to vector<4x8xi32>
    %97 = arith.addi %93, %96 : vector<4x8xi32>
    %98 = arith.select %95, %97, %93 : vector<4x8xi1>, vector<4x8xi32>
    %c8_i32_40 = arith.constant 8 : i32
    %99 = vector.broadcast %c8_i32_40 : i32 to vector<4x8xi32>
    %100 = arith.cmpi sge, %98, %99 : vector<4x8xi32>
    %c8_i32_41 = arith.constant 8 : i32
    %101 = vector.broadcast %c8_i32_41 : i32 to vector<4x8xi32>
    %102 = arith.subi %98, %101 : vector<4x8xi32>
    %103 = arith.select %100, %102, %98 : vector<4x8xi1>, vector<4x8xi32>
    %104 = arith.cmpi eq, %70, %103 : vector<4x8xi32>
    %105 = arith.extui %104 : vector<4x8xi1> to vector<4x8xi32>
    %106 = arith.sitofp %105 : vector<4x8xi32> to vector<4x8xf32>
    %cst_42 = arith.constant dense<0.000000e+00> : vector<4x4xf32>
    %107 = tpu.matmul %106, %65, %cst_42 {dimension_numbers = #tpu.dot_dimension_numbers<[1], [0], [0], [1], [0, 0, 1, 1], [], []>} : vector<4x8xf32>, vector<8x4xf32>, vector<4x4xf32> -> vector<4x4xf32>
    %cst_43 = arith.constant dense<0.000000e+00> : vector<4x4xf32>
    %108 = tpu.matmul %107, %1, %cst_43 {dimension_numbers = #tpu.dot_dimension_numbers<[1], [0], [0], [1], [0, 0, 1, 1], [], []>} : vector<4x4xf32>, vector<4x4xf32>, vector<4x4xf32> -> vector<4x4xf32>
    %109 = arith.addf %89, %108 : vector<4x4xf32>
    %c2_i32_44 = arith.constant 2 : i32
    %110 = vector.broadcast %c2_i32_44 : i32 to vector<4x8xi32>
    %111 = arith.muli %110, %69 : vector<4x8xi32>
    %c1_i32_45 = arith.constant 1 : i32
    %112 = vector.broadcast %c1_i32_45 : i32 to vector<4x8xi32>
    %113 = arith.addi %111, %112 : vector<4x8xi32>
    %c0_i32_46 = arith.constant 0 : i32
    %114 = vector.broadcast %c0_i32_46 : i32 to vector<4x8xi32>
    %115 = arith.cmpi slt, %113, %114 : vector<4x8xi32>
    %c8_i32_47 = arith.constant 8 : i32
    %116 = vector.broadcast %c8_i32_47 : i32 to vector<4x8xi32>
    %117 = arith.addi %113, %116 : vector<4x8xi32>
    %118 = arith.select %115, %117, %113 : vector<4x8xi1>, vector<4x8xi32>
    %c8_i32_48 = arith.constant 8 : i32
    %119 = vector.broadcast %c8_i32_48 : i32 to vector<4x8xi32>
    %120 = arith.cmpi sge, %118, %119 : vector<4x8xi32>
    %c8_i32_49 = arith.constant 8 : i32
    %121 = vector.broadcast %c8_i32_49 : i32 to vector<4x8xi32>
    %122 = arith.subi %118, %121 : vector<4x8xi32>
    %123 = arith.select %120, %122, %118 : vector<4x8xi1>, vector<4x8xi32>
    %124 = arith.cmpi eq, %70, %123 : vector<4x8xi32>
    %125 = arith.extui %124 : vector<4x8xi1> to vector<4x8xi32>
    %126 = arith.sitofp %125 : vector<4x8xi32> to vector<4x8xf32>
    %cst_50 = arith.constant dense<0.000000e+00> : vector<4x4xf32>
    %127 = tpu.matmul %126, %65, %cst_50 {dimension_numbers = #tpu.dot_dimension_numbers<[1], [0], [0], [1], [0, 0, 1, 1], [], []>} : vector<4x8xf32>, vector<8x4xf32>, vector<4x4xf32> -> vector<4x4xf32>
    %cst_51 = arith.constant dense<0.000000e+00> : vector<4x4xf32>
    %128 = tpu.matmul %127, %2, %cst_51 {dimension_numbers = #tpu.dot_dimension_numbers<[1], [0], [0], [1], [0, 0, 1, 1], [], []>} : vector<4x4xf32>, vector<4x4xf32>, vector<4x4xf32> -> vector<4x4xf32>
    %129 = arith.addf %109, %128 : vector<4x4xf32>
    %c0_52 = arith.constant 0 : index
    %c0_53 = arith.constant 0 : index
    %c0_54 = arith.constant 0 : index
    %130 = vector.load %arg6[%c0_52, %c0_53, %c0_54] : memref<1x4x4xf32, #tpu.memory_space<vmem>>, vector<1x4x4xf32>
    %131 = vector.shape_cast %130 : vector<1x4x4xf32> to vector<4x4xf32>
    %132 = vector.shape_cast %129 : vector<4x4xf32> to vector<1x4x4xf32>
    tpu.vector_store %arg6[%c0_52, %c0_53, %c0_54], %132 {strides = array<i32>} : memref<1x4x4xf32, #tpu.memory_space<vmem>>, vector<1x4x4xf32>,
    %133 = tpu.iota {dimensions = array<i32: 0>} : vector<2x4xi32>
    %134 = tpu.iota {dimensions = array<i32: 1>} : vector<2x4xi32>
    %c2_i32_55 = arith.constant 2 : i32
    %135 = vector.broadcast %c2_i32_55 : i32 to vector<2x4xi32>
    %136 = arith.muli %135, %133 : vector<2x4xi32>
    %c-1_i32_56 = arith.constant -1 : i32
    %137 = vector.broadcast %c-1_i32_56 : i32 to vector<2x4xi32>
    %138 = arith.addi %136, %137 : vector<2x4xi32>
    %c0_i32_57 = arith.constant 0 : i32
    %139 = vector.broadcast %c0_i32_57 : i32 to vector<2x4xi32>
    %140 = arith.cmpi slt, %138, %139 : vector<2x4xi32>
    %c4_i32 = arith.constant 4 : i32
    %141 = vector.broadcast %c4_i32 : i32 to vector<2x4xi32>
    %142 = arith.addi %138, %141 : vector<2x4xi32>
    %143 = arith.select %140, %142, %138 : vector<2x4xi1>, vector<2x4xi32>
    %c4_i32_58 = arith.constant 4 : i32
    %144 = vector.broadcast %c4_i32_58 : i32 to vector<2x4xi32>
    %145 = arith.cmpi sge, %143, %144 : vector<2x4xi32>
    %c4_i32_59 = arith.constant 4 : i32
    %146 = vector.broadcast %c4_i32_59 : i32 to vector<2x4xi32>
    %147 = arith.subi %143, %146 : vector<2x4xi32>
    %148 = arith.select %145, %147, %143 : vector<2x4xi1>, vector<2x4xi32>
    %149 = arith.cmpi eq, %134, %148 : vector<2x4xi32>
    %150 = arith.extui %149 : vector<2x4xi1> to vector<2x4xi32>
    %151 = arith.sitofp %150 : vector<2x4xi32> to vector<2x4xf32>
    %cst_60 = arith.constant dense<0.000000e+00> : vector<2x4xf32>
    %152 = tpu.matmul %151, %129, %cst_60 {dimension_numbers = #tpu.dot_dimension_numbers<[1], [0], [0], [1], [0, 0, 1, 1], [], []>} : vector<2x4xf32>, vector<4x4xf32>, vector<2x4xf32> -> vector<2x4xf32>
    %cst_61 = arith.constant dense<0.000000e+00> : vector<2x4xf32>
    %153 = tpu.matmul %152, %0, %cst_61 {dimension_numbers = #tpu.dot_dimension_numbers<[1], [0], [0], [1], [0, 0, 1, 1], [], []>} : vector<2x4xf32>, vector<4x4xf32>, vector<2x4xf32> -> vector<2x4xf32>
    %c2_i32_62 = arith.constant 2 : i32
    %154 = vector.broadcast %c2_i32_62 : i32 to vector<2x4xi32>
    %155 = arith.muli %154, %133 : vector<2x4xi32>
    %c0_i32_63 = arith.constant 0 : i32
    %156 = vector.broadcast %c0_i32_63 : i32 to vector<2x4xi32>
    %157 = arith.addi %155, %156 : vector<2x4xi32>
    %c0_i32_64 = arith.constant 0 : i32
    %158 = vector.broadcast %c0_i32_64 : i32 to vector<2x4xi32>
    %159 = arith.cmpi slt, %157, %158 : vector<2x4xi32>
    %c4_i32_65 = arith.constant 4 : i32
    %160 = vector.broadcast %c4_i32_65 : i32 to vector<2x4xi32>
    %161 = arith.addi %157, %160 : vector<2x4xi32>
    %162 = arith.select %159, %161, %157 : vector<2x4xi1>, vector<2x4xi32>
    %c4_i32_66 = arith.constant 4 : i32
    %163 = vector.broadcast %c4_i32_66 : i32 to vector<2x4xi32>
    %164 = arith.cmpi sge, %162, %163 : vector<2x4xi32>
    %c4_i32_67 = arith.constant 4 : i32
    %165 = vector.broadcast %c4_i32_67 : i32 to vector<2x4xi32>
    %166 = arith.subi %162, %165 : vector<2x4xi32>
    %167 = arith.select %164, %166, %162 : vector<2x4xi1>, vector<2x4xi32>
    %168 = arith.cmpi eq, %134, %167 : vector<2x4xi32>
    %169 = arith.extui %168 : vector<2x4xi1> to vector<2x4xi32>
    %170 = arith.sitofp %169 : vector<2x4xi32> to vector<2x4xf32>
    %cst_68 = arith.constant dense<0.000000e+00> : vector<2x4xf32>
    %171 = tpu.matmul %170, %129, %cst_68 {dimension_numbers = #tpu.dot_dimension_numbers<[1], [0], [0], [1], [0, 0, 1, 1], [], []>} : vector<2x4xf32>, vector<4x4xf32>, vector<2x4xf32> -> vector<2x4xf32>
    %cst_69 = arith.constant dense<0.000000e+00> : vector<2x4xf32>
    %172 = tpu.matmul %171, %1, %cst_69 {dimension_numbers = #tpu.dot_dimension_numbers<[1], [0], [0], [1], [0, 0, 1, 1], [], []>} : vector<2x4xf32>, vector<4x4xf32>, vector<2x4xf32> -> vector<2x4xf32>
    %173 = arith.addf %153, %172 : vector<2x4xf32>
    %c2_i32_70 = arith.constant 2 : i32
    %174 = vector.broadcast %c2_i32_70 : i32 to vector<2x4xi32>
    %175 = arith.muli %174, %133 : vector<2x4xi32>
    %c1_i32_71 = arith.constant 1 : i32
    %176 = vector.broadcast %c1_i32_71 : i32 to vector<2x4xi32>
    %177 = arith.addi %175, %176 : vector<2x4xi32>
    %c0_i32_72 = arith.constant 0 : i32
    %178 = vector.broadcast %c0_i32_72 : i32 to vector<2x4xi32>
    %179 = arith.cmpi slt, %177, %178 : vector<2x4xi32>
    %c4_i32_73 = arith.constant 4 : i32
    %180 = vector.broadcast %c4_i32_73 : i32 to vector<2x4xi32>
    %181 = arith.addi %177, %180 : vector<2x4xi32>
    %182 = arith.select %179, %181, %177 : vector<2x4xi1>, vector<2x4xi32>
    %c4_i32_74 = arith.constant 4 : i32
    %183 = vector.broadcast %c4_i32_74 : i32 to vector<2x4xi32>
    %184 = arith.cmpi sge, %182, %183 : vector<2x4xi32>
    %c4_i32_75 = arith.constant 4 : i32
    %185 = vector.broadcast %c4_i32_75 : i32 to vector<2x4xi32>
    %186 = arith.subi %182, %185 : vector<2x4xi32>
    %187 = arith.select %184, %186, %182 : vector<2x4xi1>, vector<2x4xi32>
    %188 = arith.cmpi eq, %134, %187 : vector<2x4xi32>
    %189 = arith.extui %188 : vector<2x4xi1> to vector<2x4xi32>
    %190 = arith.sitofp %189 : vector<2x4xi32> to vector<2x4xf32>
    %cst_76 = arith.constant dense<0.000000e+00> : vector<2x4xf32>
    %191 = tpu.matmul %190, %129, %cst_76 {dimension_numbers = #tpu.dot_dimension_numbers<[1], [0], [0], [1], [0, 0, 1, 1], [], []>} : vector<2x4xf32>, vector<4x4xf32>, vector<2x4xf32> -> vector<2x4xf32>
    %cst_77 = arith.constant dense<0.000000e+00> : vector<2x4xf32>
    %192 = tpu.matmul %191, %2, %cst_77 {dimension_numbers = #tpu.dot_dimension_numbers<[1], [0], [0], [1], [0, 0, 1, 1], [], []>} : vector<2x4xf32>, vector<4x4xf32>, vector<2x4xf32> -> vector<2x4xf32>
    %193 = arith.addf %173, %192 : vector<2x4xf32>
    %c0_78 = arith.constant 0 : index
    %c0_79 = arith.constant 0 : index
    %c0_80 = arith.constant 0 : index
    %194 = vector.load %arg7[%c0_78, %c0_79, %c0_80] : memref<1x2x4xf32, #tpu.memory_space<vmem>>, vector<1x2x4xf32>
    %195 = vector.shape_cast %194 : vector<1x2x4xf32> to vector<2x4xf32>
    %196 = vector.shape_cast %193 : vector<2x4xf32> to vector<1x2x4xf32>
    tpu.vector_store %arg7[%c0_78, %c0_79, %c0_80], %196 {strides = array<i32>} : memref<1x2x4xf32, #tpu.memory_space<vmem>>, vector<1x2x4xf32>,
    return
  }
  func.func @transform_0(%arg0: i32) -> (i32, i32, i32) {
    %c0_i32 = arith.constant 0 : i32
    %c0_i32_0 = arith.constant 0 : i32
    %c0_i32_1 = arith.constant 0 : i32
    return %arg0, %c0_i32, %c0_i32_0 : i32, i32, i32
  }
  func.func @transform_1(%arg0: i32) -> (i32, i32) {
    %c0_i32 = arith.constant 0 : i32
    %c0_i32_0 = arith.constant 0 : i32
    %c0_i32_1 = arith.constant 0 : i32
    return %c0_i32, %c0_i32_0 : i32, i32
  }
  func.func @transform_2(%arg0: i32) -> (i32, i32) {
    %c0_i32 = arith.constant 0 : i32
    %c0_i32_0 = arith.constant 0 : i32
    %c0_i32_1 = arith.constant 0 : i32
    return %c0_i32, %c0_i32_0 : i32, i32
  }
  func.func @transform_3(%arg0: i32) -> (i32, i32) {
    %c0_i32 = arith.constant 0 : i32
    %c0_i32_0 = arith.constant 0 : i32
    %c0_i32_1 = arith.constant 0 : i32
    return %c0_i32, %c0_i32_0 : i32, i32
  }
  func.func @transform_4(%arg0: i32) -> (i32, i32, i32) {
    %c0_i32 = arith.constant 0 : i32
    %c0_i32_0 = arith.constant 0 : i32
    %c0_i32_1 = arith.constant 0 : i32
    return %arg0, %c0_i32, %c0_i32_0 : i32, i32, i32
  }
  func.func @transform_5(%arg0: i32) -> (i32, i32, i32) {
    %c0_i32 = arith.constant 0 : i32
    %c0_i32_0 = arith.constant 0 : i32
    %c0_i32_1 = arith.constant 0 : i32
    return %arg0, %c0_i32, %c0_i32_0 : i32, i32, i32
  }
  func.func @transform_6(%arg0: i32) -> (i32, i32, i32) {
    %c0_i32 = arith.constant 0 : i32
    %c0_i32_0 = arith.constant 0 : i32
    %c0_i32_1 = arith.constant 0 : i32
    return %arg0, %c0_i32, %c0_i32_0 : i32, i32, i32
  }
}

</mosaic_0001>

<bundles_post_ra>
// kernel: multi_scale_downsample.1
= control target key start
LH: loop header
LB: loop body
LE: loop exit
PB: predicated region body
PF: predicated region fallthrough
CT: control target
= control target key end

     0   :  { %12 = vsyncpa [#allocation3], 0  ;;  %s2531_s0 = inlined_call_operand.vmem [shape: f32[2,16,4], index: 0, kind: input, shape index: {}]   ;;  %s2532_s1 = inlined_call_operand.vmem [shape: f32[4,4], index: 1, kind: input, shape index: {}]   ;;  %s2533_s2 = inlined_call_operand.vmem [shape: f32[4,4], index: 2, kind: input, shape index: {}]   ;;  %s2534_s3 = inlined_call_operand.vmem [shape: f32[4,4], index: 3, kind: input, shape index: {}]   ;;  %s2535_s4 = inlined_call_operand.vmem [shape: f32[2,8,4], index: 4, kind: output, shape index: {0}]   ;;  %s2536_s5 = inlined_call_operand.hbm [shape: f32[2,4,4], index: 5, kind: output, shape index: {1}]   ;;  %s2537_s6 = inlined_call_operand.hbm [shape: f32[2,2,4], index: 6, kind: output, shape index: {2}]  }
   0x1   :  { %14 = vsyncpa [#allocation3 + $0x1], 0 }
   0x2   :  { %15 = vsyncpa [#allocation5], 0 }
   0x3   :  { %17 = vsyncpa [#allocation5 + $0x1], 0  ;;  %s2226_s21 = smov 0   ;;  %s2228_s22 = smov 0  }
   0x4   :  { %s2230_s23 = smov 0   ;;  %s2232_s24 = smov 0  }
   0x5 LB: > { %s2247_s25 = sadd.s32 4294967295, %s2185_s24   ;;  %s1850_s26 = sadd.s32 4294967294, %s2185_s24   ;;  %s2185_s24 = sphi %s2232_s24, %s2543_s24   ;;  %s2181_s23 = sphi %s2230_s23, %s2542_s23   ;;  %s2177_s22 = sphi %s2228_s22, %s2541_s22   ;;  %s2173_s21 = sphi %s2226_s21, %s2540_s21  }
   0x6   : > { %s2251_s27 = sadd.s32 1, %s2185_s24   ;;  %s145_s28 = sadd.s32 1, %s2181_s23 }
   0x7   : > { %s142_s29 = ssub.s32 %s2185_s24, %s2251_s27  ;;  %p155_p0 = scmp.ne.s32.totalorder %s2181_s23, %s2177_s22 }
   0x8   : > { %p143_p1 = scmp.eq.s32.totalorder %s142_s29, 0  ;;  %p156_p2 = scmp.eq.s32.totalorder %s2247_s25, 1 }
   0x9   : > { %p161_p3 = scmp.ne.s32.totalorder %s2177_s22, %s2173_s21  ;;  %p162_p4 = scmp.eq.s32.totalorder %s1850_s26, 1 }
   0xa   : > { %s2262_s30 = scalar_select %p143_p1, %s2181_s23, %s145_s28  }
   0xb   : > { %p2264_p5 = por %p156_p2, %p155_p0  ;;  %p2268_p6 = por %p162_p4, %p161_p3 }
   0xc   : > { %p1853_p7 = scmp.ge.s32.totalorder %s2185_s24, 1  ;;  %p223_p8 = scmp.lt.s32.totalorder %s2185_s24, 3 }
   0xe   : > { %p224_p9 = pnand %p1853_p7, %p223_p8 }
   0xf   : > { %p262_p10 = scmp.lt.s32.totalorder (!%p224_p9), %s2247_s25, 1  ;;  %s1909_s12 = sshll.u32 (!%p224_p9), %s2247_s25, 6 }
  0x10   : > { %227 = sbr.rel (%p224_p9) target bundleno = 1805 (0x70d), region = 36  ;;  %s1720_s15 = scalar_lea.hbm (!%p224_p9), %s2536_s5, %s1909_s12 }
  0x11   : > { %s2189_s19 = smov (!%p224_p9), [#allocation2]  }
  0x15   : > { %v276_v0 = vlaneseq  ;;  %v2187_v1 = vmov 0.0   ;;  %s2278_s9 = scalar_select %p262_p10, %s2247_s25, 1  ;;  %vm2188_vm0 = vmmov 0   ;;  %vm291_vm4 = vcmask 130048   ;;  %v2322_v18 = vld [vmem:[%s2533_s2] sm:$0xf] }
  0x16   : > { %1960 = vmatprep.subr.mxu1 %v2187_v1  ;;  %1953 = vmatprep.subr.mxu0 %v2187_v1  ;;  %vm451_vm8 = vcmask 1043456   ;;  %v2330_v19 = vld [vmem:[%s2532_s1] sm:$0xf]  ;;  %vm447_vm11 = vcmask 31744  }
  0x17   : > { %1964 = vmatprep.mubr.msk.f32.mxu1 %vm2188_vm0, %v2187_v1  ;;  %v277_v2 = vshrl.u32 %v276_v0, 7  ;;  %1957 = vmatprep.mubr.msk.f32.mxu0 %vm2188_vm0, %v2187_v1  ;;  %s1913_s10 = sshll.u32 %s2278_s9, 4  ;;  %v2297_v8 = vand.u32 127, %v276_v0  ;;  %v2359_v30 = vld [vmem:[%s2534_s3] sm:$0xf]  ;;  %s1858_s20 = sshll.u32 %s2278_s9, 3 }
  0x18   : > { %s266_s13 = scalar_lea.vmem %s2531_s0, %s1913_s10  ;;  %s270_s29 = scalar_lea.vmem %s2535_s4, %s1858_s20 }
  0x19   : > { %v2285_v3 = vmul.u32 2, %v277_v2  ;;  %v275_v4 = vld [vmem:[%s266_s13 + $0x8] sm:$0xff]  ;;  %v274_v5 = vld [vmem:[%s266_s13] sm:$0xff]  ;;  %s2429_s9 = sand.u32 1, %s2177_s22   ;;  %s2099_s20 = sshll.u32 %s2189_s19, 4  ;;  %s2100_s20 = int_to_ptr.vmem [resolvable:$false] %s2099_s20 }
  0x1a   : > { %1961 = vmatpush3.msra.mxu1 %v275_v4  ;;  %1954 = vmatpush3.msra.mxu0 %v275_v4  ;;  %s1854_s10 = sshll.u32 %s2429_s9, 2  ;;  %s1701_s17 = scalar_lea.sflag [#allocation3], %s2429_s9 }
  0x1b   : > { %vm365_vm1 = vcmp.lt.s32.totalorder %v2285_v3, 0  ;;  %v366_v6 = vadd.s32 16, %v2285_v3  ;;  %v2293_v7 = vadd.s32 4294967295, %v2285_v3  ;;  %1962 = vmatprep.subr.mxu1 %v2187_v1  ;;  %1955 = vmatprep.subr.mxu0 %v2187_v1  ;;  %v2336_v20 = vadd.s32 1, %v2285_v3  ;;  %s2438_s11 = scalar_lea.vmem [#allocation2], %s1854_s10  ;;  %s2101_s26 = scalar_lea.vmem %s2100_s20, 128 }
  0x1c   : > { %1963 = vmatpush3.msra.mxu1 %v274_v5  ;;  %1956 = vmatpush3.msra.mxu0 %v274_v5  ;;  %v844_v39 = vadd.s32 8, %v2285_v3  ;;  %s1722_s16 = sshll.u32 %s2438_s11, 4  ;;  %s1723_s16 = int_to_ptr.vmem [resolvable:$true] %s1722_s16 }
  0x1d   : > { %v367_v9 = vsel %vm365_vm1, %v366_v6, %v2285_v3  ;;  %vm282_vm2 = vcmp.lt.s32.totalorder %v2293_v7, 0  ;;  %v283_v10 = vadd.s32 16, %v2293_v7  ;;  %1967 = vmatprep.subr.mxu0 %v2187_v1  ;;  %1972 = vmatprep.subr.mxu1 %v2187_v1  ;;  %v603_v21 = vadd.s32 16, %v2336_v20  ;;  %s2095_s18 = scalar_lea.vmem %s1723_s16, 64  ;;  %p2102_p0 = scmp.lt.s32.totalorder %s1723_s16, %s2100_s20 }
  0x1e   : > { %vm368_vm3 = vcmp.ge.s32.totalorder %v367_v9, 16  ;;  %v1862_v11 = vadd.s32 4294967280, %v367_v9  ;;  %vm602_vm9 = vcmp.lt.s32.totalorder %v2336_v20, 0  ;;  %v762_v38 = vadd.s32 8, %v2293_v7  ;;  %p2096_p11 = scmp.ne.s32.totalorder %s1723_s16, %s2095_s18  ;;  %p2103_p1 = scmp.lt.s32.totalorder %s2101_s26, %s2095_s18 }
  0x1f   : > { %v284_v12 = vsel %vm282_vm2, %v283_v10, %v2293_v7  ;;  %v604_v22 = vsel %vm602_vm9, %v603_v21, %v2336_v20  ;;  %v845_v41 = vsel %vm365_vm1, %v844_v39, %v2285_v3  ;;  %v1071_v51 = vadd.s32 8, %v2336_v20 }
  0x20   : > { %v370_v13 = vsel %vm368_vm3, %v1862_v11, %v367_v9  ;;  %vm285_vm5 = vcmp.ge.s32.totalorder %v284_v12, 16  ;;  %v1859_v14 = vadd.s32 4294967280, %v284_v12  ;;  %v1869_v23 = vadd.s32 4294967280, %v604_v22  ;;  %p2097_p12 = pnand %p2096_p11, %p2264_p5  ;;  %p2104_p2 = por %p2103_p1, %p2102_p0 }
  0x21   : > { %vm371_vm6 = vcmp.eq.s32.totalorder %v2297_v8, %v370_v13  ;;  %vm605_vm10 = vcmp.ge.s32.totalorder %v604_v22, 16  ;;  %v763_v40 = vsel %vm282_vm2, %v762_v38, %v2293_v7  ;;  %v1877_v43 = vadd.s32 4294967288, %v845_v41 }
  0x22   : > { %v1863_v15 = vsel %vm371_vm6, 1.0, %v2187_v1  ;;  %v287_v16 = vsel %vm285_vm5, %v1859_v14, %v284_v12  ;;  %v607_v24 = vsel %vm605_vm10, %v1869_v23, %v604_v22  ;;  %v1874_v42 = vadd.s32 4294967288, %v763_v40  ;;  %p2098_p13 = pneg %p2097_p12 }
  0x23   : > { %1965 = vmatmul.mubr.msk.f32.vlgmr.msra.gmra.mxu1 %vm291_vm4, %v1863_v15  ;;  %vm288_vm7 = vcmp.eq.s32.totalorder %v2297_v8, %v287_v16  ;;  %vm608_vm12 = vcmp.eq.s32.totalorder %v2297_v8, %v607_v24  ;;  %vm764_vm13 = vcmp.ge.s32.totalorder %v763_v40, 8  ;;  %vm846_vm14 = vcmp.ge.s32.totalorder %v845_v41, 8 }
  0x24   : > { %v1860_v17 = vsel %vm288_vm7, 1.0, %v2187_v1  ;;  %1974 = vmatprep.mubr.msk.f32.mxu1 %vm2188_vm0, %v2187_v1  ;;  %1973 = vmatpush3.msk.msra.mxu1 %vm451_vm8, %v2330_v19  ;;  %v1870_v28 = vsel %vm608_vm12, 1.0, %v2187_v1  ;;  %v766_v44 = vsel %vm764_vm13, %v1874_v42, %v763_v40  ;;  %v848_v45 = vsel %vm846_vm14, %v1877_v43, %v845_v41  ;;  %p2105_p3 = pnand %p2104_p2, %p2098_p13 }
  0x25   : > { %1958 = vmatmul.mubr.msk.f32.vlgmr.msra.gmra.mxu0 %vm291_vm4, %v1860_v17  ;;  %1984 = vmatprep.subr.mxu1 %v2187_v1  ;;  %vm767_vm15 = vcmp.eq.s32.totalorder %v2297_v8, %v766_v44  ;;  %vm849_vm3 = vcmp.eq.s32.totalorder %v2297_v8, %v848_v45  ;;  %v1072_v52 = vsel %vm602_vm9, %v1071_v51, %v2336_v20  ;;  %v1228_v6 = vadd.s32 4, %v2293_v7 }
  0x26   : > { %1969 = vmatprep.mubr.msk.f32.mxu0 %vm2188_vm0, %v2187_v1  ;;  %1968 = vmatpush3.msk.msra.mxu0 %vm451_vm8, %v2322_v18  ;;  %v1875_v48 = vsel %vm767_vm15, 1.0, %v2187_v1  ;;  %v1878_v49 = vsel %vm849_vm3, 1.0, %v2187_v1  ;;  %v1884_v53 = vadd.s32 4294967288, %v1072_v52  ;;  %vm1073_vm5 = vcmp.ge.s32.totalorder %v1072_v52, 8 }
  0x27   : > { %1977 = vmatprep.subr.mxu0 %v2187_v1  ;;  %v1229_v10 = vsel %vm282_vm2, %v1228_v6, %v2293_v7  ;;  %v1539_v21 = vadd.s32 4, %v2336_v20 }
  0x28   : > { %v1075_v54 = vsel %vm1073_vm5, %v1884_v53, %v1072_v52  ;;  %v1889_v12 = vadd.s32 4294967292, %v1229_v10  ;;  %vm1230_vm10 = vcmp.ge.s32.totalorder %v1229_v10, 4 }
  0x29   : > { %vm1076_vm6 = vcmp.eq.s32.totalorder %v2297_v8, %v1075_v54  ;;  %v1540_v22 = vsel %vm602_vm9, %v1539_v21, %v2336_v20 }
  0x2a   : > { %v1885_v58 = vsel %vm1076_vm6, 1.0, %v2187_v1  ;;  %v1232_v14 = vsel %vm1230_vm10, %v1889_v12, %v1229_v10  ;;  %v1901_v23 = vadd.s32 4294967292, %v1540_v22  ;;  %vm1541_vm2 = vcmp.ge.s32.totalorder %v1540_v22, 4 }
  0x2b   : > { %vm1233_vm13 = vcmp.eq.s32.totalorder %v2297_v8, %v1232_v14 }
  0x2c   : > { %v1890_v7 = vsel %vm1233_vm13, 1.0, %v2187_v1 }
  0xe3   : > { %v443_v25 = vpop.f32.mrf.mxu1 }
  0xe4   : > { %1970 = vmatmul.mubr.msk.f32.vlgmr.msra.gmra.mxu0 %vm447_vm11, %v443_v25 }
  0xe5   : > { %v361_v26 = vpop.f32.mrf.mxu0  ;;  %v1966_v27 = vpop.f32.mrf.mxu1  ;;  %1978 = vmatpush3.msra.mxu0 %v275_v4  ;;  %1981 = vmatprep.mubr.msk.f32.mxu0 %vm2188_vm0, %v2187_v1 }
  0xe6   : > { %1975 = vmatmul.mubr.msk.f32.vlgmr.msra.gmra.mxu1 %vm447_vm11, %v361_v26  ;;  %1979 = vmatprep.subr.mxu0 %v2187_v1 }
  0xe7   : > { %1980 = vmatpush3.msra.mxu0 %v274_v5  ;;  %v1959_v29 = vpop.f32.mrf.mxu0  ;;  %1986 = vmatprep.mubr.msk.f32.mxu1 %vm2188_vm0, %v2187_v1  ;;  %v1312_v5 = vadd.s32 4, %v2285_v3 }
  0xe8   : > { %1982 = vmatmul.mubr.msk.f32.vlgmr.msra.gmra.mxu0 %vm291_vm4, %v1870_v28  ;;  %1989 = vmatprep.subr.mxu0 %v2187_v1  ;;  %vm770_vm4 = vcmask 64512  }
  0xe9   : > { %1991 = vmatprep.mubr.msk.f32.mxu0 %vm2188_vm0, %v2187_v1  ;;  %1985 = vmatpush3.msk.msra.mxu1 %vm451_vm8, %v2359_v30  ;;  %v1313_v9 = vsel %vm365_vm1, %v1312_v5, %v2285_v3  ;;  %vm1226_vm1 = vcmask 27648  }
  0xea   : > { %1994 = vmatprep.subr.mxu1 %v2187_v1  ;;  %v1893_v11 = vadd.s32 4294967292, %v1313_v9  ;;  %vm1314_vm7 = vcmp.ge.s32.totalorder %v1313_v9, 4 }
  0xec   : > { %v1316_v13 = vsel %vm1314_vm7, %v1893_v11, %v1313_v9 }
  0xed   : > { %vm1317_vm12 = vcmp.eq.s32.totalorder %v2297_v8, %v1316_v13 }
  0xee   : > { %v1894_v16 = vsel %vm1317_vm12, 1.0, %v2187_v1 }
 0x1a4   : > { %v521_v31 = vpop.f32.mrf.mxu0 }
 0x1a6   : > { %v1971_v32 = vpop.f32.mrf.mxu0  ;;  %v597_v33 = vpop.f32.mrf.mxu1 }
 0x1a7   : > { %v598_v34 = vadd.f32 %v597_v33, %v521_v31 }
 0x1a8   : > { %v680_v35 = vpop.f32.mrf.mxu0  ;;  %v1976_v36 = vpop.f32.mrf.mxu1 }
 0x1a9   : > { %1987 = vmatmul.mubr.msk.f32.vlgmr.msra.gmra.mxu1 %vm447_vm11, %v680_v35 }
 0x1aa   : > { %v1983_v37 = vpop.f32.mrf.mxu0  ;;  %1996 = vmatprep.mubr.msk.f32.mxu1 %vm2188_vm0, %v2187_v1 }
 0x269   : > { %v756_v46 = vpop.f32.mrf.mxu1 }
 0x26a   : > { %v760_v47 = vadd.f32 %v756_v46, %v598_v34 }
 0x26b   : > { %v1988_v50 = vpop.f32.mrf.mxu1 }
 0x26c   : > { %761 = vst.msk [vmem:[%s270_s29] sm:$0xff] %vm447_vm11, %v760_v47  ;;  %1990 = vmatpush3.msra.mxu0 %v760_v47  ;;  %1995 = vmatpush3.msra.mxu1 %v760_v47 }
 0x26d   : > { %1992 = vmatmul.mubr.msk.f32.vlgmr.msra.gmra.mxu0 %vm770_vm4, %v1875_v48  ;;  %1997 = vmatmul.mubr.msk.f32.vlgmr.msra.gmra.mxu1 %vm770_vm4, %v1878_v49 }
 0x26e   : > { %1999 = vmatprep.subr.mxu0 %v2187_v1  ;;  %2004 = vmatprep.subr.mxu1 %v2187_v1 }
 0x26f   : > { %2000 = vmatpush3.msk.msra.mxu0 %vm451_vm8, %v2322_v18  ;;  %2001 = vmatprep.mubr.msk.f32.mxu0 %vm2188_vm0, %v2187_v1 }
 0x270   : > { %2005 = vmatpush3.msk.msra.mxu1 %vm451_vm8, %v2330_v19  ;;  %2006 = vmatprep.mubr.msk.f32.mxu1 %vm2188_vm0, %v2187_v1 }
 0x271   : > { %2009 = vmatprep.subr.mxu0 %v2187_v1  ;;  %2014 = vmatprep.subr.mxu1 %v2187_v1 }
 0x32d   : > { %v840_v55 = vpop.f32.mrf.mxu0  ;;  %v921_v56 = vpop.f32.mrf.mxu1 }
 0x32e   : > { %2002 = vmatmul.mubr.msk.f32.vlgmr.msra.gmra.mxu0 %vm447_vm11, %v921_v56  ;;  %2007 = vmatmul.mubr.msk.f32.vlgmr.msra.gmra.mxu1 %vm447_vm11, %v840_v55 }
 0x32f   : > { %2010 = vmatpush3.msra.mxu0 %v760_v47  ;;  %v1998_v57 = vpop.f32.mrf.mxu1  ;;  %2011 = vmatprep.mubr.msk.f32.mxu0 %vm2188_vm0, %v2187_v1  ;;  %v1993_v59 = vpop.f32.mrf.mxu0 }
 0x330   : > { %2015 = vmatpush3.msk.msra.mxu1 %vm451_vm8, %v2359_v30  ;;  %2016 = vmatprep.mubr.msk.f32.mxu1 %vm2188_vm0, %v2187_v1 }
 0x331   : > { %2019 = vmatprep.subr.mxu0 %v2187_v1  ;;  %2024 = vmatprep.subr.mxu1 %v2187_v1 }
 0x332   : > { %2012 = vmatmul.mubr.msk.f32.vlgmr.msra.gmra.mxu0 %vm770_vm4, %v1885_v58 }
 0x333   : > { %2021 = vmatprep.mubr.msk.f32.mxu0 %vm2188_vm0, %v2187_v1 }
 0x3ee   : > { %v994_v60 = vpop.f32.mrf.mxu0  ;;  %v1067_v61 = vpop.f32.mrf.mxu1 }
 0x3ef   : > { %v1068_v62 = vadd.f32 %v1067_v61, %v994_v60 }
 0x3f0   : > { %v2003_v63 = vpop.f32.mrf.mxu0  ;;  %v2008_v0 = vpop.f32.mrf.mxu1 }
 0x3f2   : > { %v1148_v2 = vpop.f32.mrf.mxu0 }
 0x3f3   : > { %2017 = vmatmul.mubr.msk.f32.vlgmr.msra.gmra.mxu1 %vm447_vm11, %v1148_v2 }
 0x3f4   : > { %v2013_v4 = vpop.f32.mrf.mxu0  ;;  %2026 = vmatprep.mubr.msk.f32.mxu1 %vm2188_vm0, %v2187_v1 }
 0x4b3   : > { %v1221_v15 = vpop.f32.mrf.mxu1 }
 0x4b4   : > { %v1225_v3 = vadd.f32 %v1221_v15, %v1068_v62 }
 0x4b5   : > { %v2018_v17 = vpop.f32.mrf.mxu1 }
 0x4b6   : > { %2020 = vmatpush3.msk.msra.mxu0 %vm451_vm8, %v1225_v3  ;;  %2025 = vmatpush3.msk.msra.mxu1 %vm451_vm8, %v1225_v3  ;;  %1227 = vst.msk [vmem:[%s2438_s11] sm:$0xf] %vm1226_vm1, %v1225_v3 }
 0x4b7   : > { %2027 = vmatmul.mubr.msk.f32.vlgmr.msra.gmra.mxu1 %vm447_vm11, %v1894_v16  ;;  %2022 = vmatmul.mubr.msk.f32.vlgmr.msra.gmra.mxu0 %vm447_vm11, %v1890_v7 }
 0x4b8   : > { %2029 = vmatprep.subr.mxu0 %v2187_v1  ;;  %2031 = vmatprep.mubr.msk.f32.mxu0 %vm2188_vm0, %v2187_v1 }
 0x4b9   : > { %2030 = vmatpush3.msk.msra.mxu0 %vm451_vm8, %v2322_v18  ;;  %2034 = vmatprep.subr.mxu1 %v2187_v1  ;;  %v1543_v18 = vsel %vm1541_vm2, %v1901_v23, %v1540_v22 }
 0x4ba   : > { %2039 = vmatprep.subr.mxu0 %v2187_v1  ;;  %2035 = vmatpush3.msk.msra.mxu1 %vm451_vm8, %v2330_v19  ;;  %vm1544_vm14 = vcmp.eq.s32.totalorder %v2297_v8, %v1543_v18 }
 0x4bb   : > { %2036 = vmatprep.mubr.msk.f32.mxu1 %vm2188_vm0, %v2187_v1  ;;  %2044 = vmatprep.subr.mxu1 %v2187_v1  ;;  %v1902_v20 = vsel %vm1544_vm14, 1.0, %v2187_v1 }
 0x577   : > { %v1389_v24 = vpop.f32.mrf.mxu1  ;;  %v1308_v25 = vpop.f32.mrf.mxu0 }
 0x578   : > { %2032 = vmatmul.mubr.msk.f32.vlgmr.msra.gmra.mxu0 %vm447_vm11, %v1389_v24  ;;  %2037 = vmatmul.mubr.msk.f32.vlgmr.msra.gmra.mxu1 %vm447_vm11, %v1308_v25 }
 0x579   : > { %2040 = vmatpush3.msk.msra.mxu0 %vm451_vm8, %v1225_v3  ;;  %v2028_v19 = vpop.f32.mrf.mxu1  ;;  %2041 = vmatprep.mubr.msk.f32.mxu0 %vm2188_vm0, %v2187_v1  ;;  %v2023_v26 = vpop.f32.mrf.mxu0 }
 0x57a   : > { %2045 = vmatpush3.msk.msra.mxu1 %vm451_vm8, %v2359_v30  ;;  %2046 = vmatprep.mubr.msk.f32.mxu1 %vm2188_vm0, %v2187_v1 }
 0x57c   : > { %2042 = vmatmul.mubr.msk.f32.vlgmr.msra.gmra.mxu0 %vm447_vm11, %v1902_v20 }
 0x638   : > { %v1462_v8 = vpop.f32.mrf.mxu0  ;;  %v1535_v27 = vpop.f32.mrf.mxu1 }
 0x639   : > { %v1536_v28 = vadd.f32 %v1535_v27, %v1462_v8 }
 0x63a   : > { %v2033_v29 = vpop.f32.mrf.mxu0  ;;  %v2038_v31 = vpop.f32.mrf.mxu1 }
 0x63c   : > { %v1616_v32 = vpop.f32.mrf.mxu0 }
 0x63d   : > { %2047 = vmatmul.mubr.msk.f32.vlgmr.msra.gmra.mxu1 %vm447_vm11, %v1616_v32 }
 0x63e   : > { %v2043_v33 = vpop.f32.mrf.mxu0 }
 0x63f   : > { %2108 = shalt.err (!%p2105_p3)
}
 0x640   : > { %s2109_s28 = scalar_lea.hbm %s1720_s15, 64  ;;  %s2113_s11 = scalar_lea.hbm %s2536_s5, 128 }
 0x641   : > { %p2110_p4 = scmp.ne.s32.totalorder %s1720_s15, %s2109_s28  ;;  %p2114_p9 = scmp.lt.s32.totalorder %s1720_s15, %s2536_s5 }
 0x642   : > { %p2115_p10 = scmp.lt.s32.totalorder %s2113_s11, %s2109_s28 }
 0x643   : > { %p2111_p7 = pnand %p2110_p4, %p2264_p5 }
 0x644   : > { %p2116_p11 = por %p2115_p10, %p2114_p9 }
 0x645   : > { %p2112_p8 = pneg %p2111_p7 }
 0x647   : > { %p2117_p12 = pnand %p2116_p11, %p2112_p8 }
 0x649   : > { %2120 = shalt.err (!%p2117_p12)
}
 0x64a   : > { %2049 = dma.vmem_to_hbm [thread:$0]  (%p2264_p5), %s1723_s16, 64, %s1720_s15, %s1701_s17   ;;  %vm1694_vm0 = vcmask 25600  }
 0x64b   : > { %s1855_s14 = sshll.u32 %s2429_s9, 1  ;;  %s1910_s18 = sshll.u32 %s2247_s25, 5 }
 0x64c   : > { %s261_s19 = scalar_lea.vmem [#allocation4], %s1855_s14  ;;  %s2495_s28 = scalar_lea.hbm %s2537_s6, %s1910_s18 }
 0x64d   : > { %s1735_s20 = sshll.u32 %s261_s19, 4  ;;  %s1706_s10 = scalar_lea.sflag [#allocation5], %s2429_s9  ;;  %s1736_s20 = int_to_ptr.vmem [resolvable:$true] %s1735_s20 }
 0x64e   : > { %s2121_s11 = scalar_lea.vmem %s1736_s20, 32  ;;  %s2190_s25 = smov [#allocation4]  }
 0x64f   : > { %p2122_p13 = scmp.ne.s32.totalorder %s1736_s20, %s2121_s11  ;;  %s2125_s15 = sshll.u32 %s2190_s25, 4  ;;  %s2126_s15 = int_to_ptr.vmem [resolvable:$false] %s2125_s15 }
 0x650   : > { %s2127_s16 = scalar_lea.vmem %s2126_s15, 64  ;;  %p2128_p2 = scmp.lt.s32.totalorder %s1736_s20, %s2126_s15 }
 0x651   : > { %p2123_p0 = pnand %p2122_p13, %p2264_p5  ;;  %p2129_p3 = scmp.lt.s32.totalorder %s2127_s16, %s2121_s11 }
 0x653   : > { %p2124_p1 = pneg %p2123_p0  ;;  %p2130_p4 = por %p2129_p3, %p2128_p2 }
 0x655   : > { %p2131_p7 = pnand %p2130_p4, %p2124_p1 }
 0x6fd   : > { %v1689_v1 = vpop.f32.mrf.mxu1 }
 0x6fe   : > { %v1693_v30 = vadd.f32 %v1689_v1, %v1536_v28 }
 0x6ff   : > { %v2048_v34 = vpop.f32.mrf.mxu1 }
 0x700   : > { %1695 = vst.msk [vmem:[%s261_s19] sm:$0x3] %vm1694_vm0, %v1693_v30 }
 0x701   : > { %2134 = shalt.err (!%p2131_p7)
}
 0x702   : > { %s2135_s17 = scalar_lea.hbm %s2495_s28, 32  ;;  %s2139_s13 = scalar_lea.hbm %s2537_s6, 64 }
 0x703   : > { %p2136_p8 = scmp.ne.s32.totalorder %s2495_s28, %s2135_s17  ;;  %p2140_p11 = scmp.lt.s32.totalorder %s2495_s28, %s2537_s6 }
 0x704   : > { %p2141_p12 = scmp.lt.s32.totalorder %s2139_s13, %s2135_s17 }
 0x705   : > { %p2137_p9 = pnand %p2136_p8, %p2264_p5 }
 0x706   : > { %p2142_p13 = por %p2141_p12, %p2140_p11 }
 0x707   : > { %p2138_p10 = pneg %p2137_p9 }
 0x709   : > { %p2143_p0 = pnand %p2142_p13, %p2138_p10 }
 0x70b   : > { %2146 = shalt.err (!%p2143_p0)
}
 0x70c   : > { %2050 = dma.vmem_to_hbm [thread:$0]  (%p2264_p5), %s1736_s20, 32, %s2495_s28, %s1706_s10  }
 0x70d PF: > { %p2060_p1 = scmp.ge.s32.totalorder %s2185_s24, 2  ;;  %s1754_s19 = sand.u32 1, %s2173_s21  }
 0x70e   : > { %s1755_s26 = scalar_lea.sflag [#allocation3], %s1754_s19 }
 0x70f   : > { %p2054_p2 = pnand %p2060_p1, %p2268_p6 }
 0x711   : > { %p2055_p3 = pneg %p2054_p2 }
 0x713   : > { %2164 = dma.done.wait (%p2055_p3), %s1755_s26, 64  }
 0x714   : > { %2166 = vsyncadd (%p2055_p3), %s1755_s26, 4294967232  ;;  %s1764_s29 = scalar_lea.sflag [#allocation5], %s1754_s19 }
 0x715   : > { %2168 = dma.done.wait (%p2055_p3), %s1764_s29, 32  }
 0x716   : > { %2170 = vsyncadd (%p2055_p3), %s1764_s29, 4294967264  ;;  %p20_p5 = scmp.ge.s32.totalorder %s2251_s27, 4   ;;  %s2540_s21 = smov %s2177_s22 }
 0x717   : > { %s2541_s22 = smov %s2181_s23  ;;  %s2542_s23 = smov %s2262_s30 }
 0x718   : > { %s2543_s24 = smov %s2251_s27  ;;  %22 = sbr.rel (!%p20_p5) target bundleno = 5 (0x5), region = 100 }
 0x71d   :  { %1769 = vsyncpa [#allocation3], 1 }
 0x71e   :  { %1771 = vsyncpa [#allocation3 + $0x1], 1 }
 0x71f   :  { %1772 = vsyncpa [#allocation5], 1 }
 0x720   :  { %1774 = vsyncpa [#allocation5 + $0x1], 1 }

</bundles_post_ra>
